<compile_context>
chip_gen: v7x
topology: tpu7x:2x2x1
jax: 0.10.0
libtpu: 0.0.40
codegen_flags: <defaults>
</compile_context>

<pallas_src>
import jax
import jax.numpy as jnp
from jax.experimental import pallas as pl
from jax.experimental.pallas import tpu as pltpu

_LANE = 128
_MAX_COLS = 8192  # lane-dense slab width cap (multiple of 128)


def _round_up(x, m):
    return ((x + m - 1) // m) * m


def _sublane(dtype):
    # sublane packing: 8 rows for 4-byte, 16 for 2-byte, 32 for 1-byte dtypes
    return {4: 8, 2: 16, 1: 32}.get(jnp.dtype(dtype).itemsize, 8)


def _tpu_topology():
    """Return (per-TensorCore VMEM bytes, TensorCores per chip), conservatively."""
    vmem = None
    num_tc = 1
    try:
        info = pltpu.get_tpu_info()
        cap = getattr(info, "vmem_capacity_bytes", None)
        if cap:
            vmem = int(cap)
        for name in ("tensorcores_per_chip", "num_tensorcores", "cores_per_chip"):
            v = getattr(info, name, None)
            if v:
                num_tc = int(v)
                break
    except Exception:
        pass
    try:
        kind = jax.devices()[0].device_kind.lower()
        if "7" in kind:  # v7x family: 2 TensorCores per chip
            num_tc = max(num_tc, 2)
    except Exception:
        pass
    if vmem is None:
        vmem = 64 << 20  # conservative fallback (v7x per-TC VMEM)
    if num_tc >= 2:
        # the query may report per-chip VMEM on multi-TC parts; stay within 64 MiB/TC
        vmem = min(vmem, 64 << 20)
    return vmem, num_tc


def _pick_cols(total):
    """Largest multiple of 128 (<= _MAX_COLS) that divides total, else 0."""
    if total % _LANE != 0:
        return 0
    c = (min(_MAX_COLS, total) // _LANE) * _LANE
    while c >= _LANE:
        if total % c == 0:
            return c
        c -= _LANE
    return 0


def _make_lambda_kernel(lambd):
    def kernel(x_ref, o_ref):
        # elementwise hot path runs on the VPU
        o_ref[...] = lambd(x_ref[...])
    return kernel


def lambda_layer(x, lambd, *, donate=False, xla_fallback_bytes=0):
    """Apply `lambd` (elementwise, shape/dtype-preserving, jnp-expressible) to x.

    donate:             alias the (flattened) input buffer to the output buffer
                        when the caller no longer needs x (halves HBM footprint).
    xla_fallback_bytes: if x is at most this many bytes, skip the kernel launch
                        and run plain XLA (useful for tiny residual-branch tensors).
    """
    orig_shape = x.shape
    dtype = x.dtype
    itemsize = jnp.dtype(dtype).itemsize
    total = int(x.size)

    # ---- degenerate / tiny-input fast paths ---------------------------------
    if total == 0:
        return lambd(x)
    if total * itemsize <= xla_fallback_bytes:
        return lambd(x)

    sublane = _sublane(dtype)

    # ---- lane-dense 2-D slab: (rows, cols), cols multiple of 128 ------------
    cols = _pick_cols(total)
    pad = 0
    if cols == 0:
        # Awkward size: pad only the trailing partial row (< 128 elements).
        # TODO(synk): a masked tail store inside the kernel would remove this
        # pad/slice round trip entirely for total % 128 != 0.
        cols = _LANE
        pad = _round_up(total, cols) - total
    rows = (total + pad) // cols

    # ---- VMEM-budgeted, sublane-aligned row tile -----------------------------
    vmem_phys, num_tc = _tpu_topology()
    row_bytes = cols * itemsize
    block_budget = max(sublane * row_bytes, vmem_phys // 10)
    max_tile = max(sublane, (block_budget // row_bytes) // sublane * sublane)

    if num_tc >= 2 and rows > sublane:
        # v7x: shard the ("parallel") grid axis across both TensorCores with an
        # (approximately) even number of blocks for load balance.
        k = 1
        row_tile = _round_up(pl.cdiv(rows, 2 * k), sublane)
        while row_tile > max_tile:
            k += 1
            row_tile = _round_up(pl.cdiv(rows, 2 * k), sublane)
    else:
        # single TensorCore (v5e/v6e): the grid is a serial loop, so never force
        # a split -- use the fewest steps the VMEM budget allows.
        row_tile = min(max_tile, _round_up(rows, sublane))

    if row_tile >= rows:
        row_tile = rows  # one full-extent block (allowed regardless of alignment)

    grid_n = pl.cdiv(rows, row_tile)
    block_bytes = row_tile * row_bytes
    vmem_limit = min(int(vmem_phys * 0.75), 4 * block_bytes + (16 << 20))

    # ---- reshape (zero-copy when pad == 0), run kernel, un-pad ---------------
    flat = x.reshape(-1)
    if pad:
        flat = jnp.pad(flat, (0, pad))
    x2 = flat.reshape(rows, cols)

    out2 = pl.pallas_call(
        _make_lambda_kernel(lambd),
        out_shape=jax.ShapeDtypeStruct((rows, cols), dtype),
        grid_spec=pl.GridSpec(
            grid=(grid_n,),
            in_specs=[pl.BlockSpec((row_tile, cols), lambda i: (i, 0))],
            out_specs=pl.BlockSpec((row_tile, cols), lambda i: (i, 0)),
        ),
        compiler_params=pltpu.CompilerParams(
            dimension_semantics=("parallel",),
            vmem_limit_bytes=vmem_limit,
        ),
        input_output_aliases=({0: 0} if donate else {}),
    )(x2)

    out_flat = out2.reshape(-1)
    if pad:
        out_flat = out_flat[:total]
    return out_flat.reshape(orig_shape)


if __name__ == "__main__":
    key = jax.random.PRNGKey(0)
    # Small NCHW input, matching PyTorch conv-input conventions.
    x = jax.random.normal(key, (2, 4, 16, 16), dtype=jnp.float32)

    # Concrete deterministic lambda (same role as `lambd` in LambdaLayer.__init__).
    lambd = lambda t: t * 2.0 + 1.0

    out = lambda_layer(x, lambd)
    out = jax.block_until_ready(out)

    # Correctness check against the pure-JAX reference of the same lambda.
    ref = lambd(x)
    assert out.shape == x.shape
    assert out.dtype == x.dtype
    assert jnp.allclose(out, ref, atol=1e-6, rtol=1e-6)

    print("KERNEL_OK")
</pallas_src>

<mosaic_0001>
module attributes {stable_mosaic.version = 11 : i64} {
  func.func @kernel(%arg0: i32, %arg1: memref<1x2048xf32, #tpu.memory_space<vmem>>, %arg2: memref<1x2048xf32, #tpu.memory_space<vmem>>) attributes {dimension_semantics = [#tpu.dimension_semantics<parallel>], iteration_bounds = array<i64: 1>, scalar_prefetch = 0 : i64, scratch_operands = 0 : i64, tpu.core_type = #tpu.core_type<tc>, window_params = [{transform_indices = @transform_0, window_bounds = array<i64: 1, 2048>}, {transform_indices = @transform_1, window_bounds = array<i64: 1, 2048>}]} {
    %c0 = arith.constant 0 : index
    %c0_0 = arith.constant 0 : index
    %0 = vector.load %arg1[%c0, %c0_0] : memref<1x2048xf32, #tpu.memory_space<vmem>>, vector<1x2048xf32>
    %cst = arith.constant 2.000000e+00 : f32
    %1 = vector.broadcast %cst : f32 to vector<1x2048xf32>
    %2 = arith.mulf %0, %1 : vector<1x2048xf32>
    %cst_1 = arith.constant 1.000000e+00 : f32
    %3 = vector.broadcast %cst_1 : f32 to vector<1x2048xf32>
    %4 = arith.addf %2, %3 : vector<1x2048xf32>
    %c0_2 = arith.constant 0 : index
    %c0_3 = arith.constant 0 : index
    %5 = vector.load %arg2[%c0_2, %c0_3] : memref<1x2048xf32, #tpu.memory_space<vmem>>, vector<1x2048xf32>
    tpu.vector_store %arg2[%c0_2, %c0_3], %4 {strides = array<i32>} : memref<1x2048xf32, #tpu.memory_space<vmem>>, vector<1x2048xf32>,
    return
  }
  func.func @transform_0(%arg0: i32) -> (i32, i32) {
    %c0_i32 = arith.constant 0 : i32
    %c0_i32_0 = arith.constant 0 : i32
    return %arg0, %c0_i32 : i32, i32
  }
  func.func @transform_1(%arg0: i32) -> (i32, i32) {
    %c0_i32 = arith.constant 0 : i32
    %c0_i32_0 = arith.constant 0 : i32
    return %arg0, %c0_i32 : i32, i32
  }
}

</mosaic_0001>

<bundles_post_ra>
// kernel: tpu_custom_call.1
= control target key start
LH: loop header
LB: loop body
LE: loop exit
PB: predicated region body
PF: predicated region fallthrough
CT: control target
= control target key end

     0   :  { %6 = vsyncpa [#allocation3], 0  ;;  %s130_s0 = inlined_call_operand.hbm [shape: f32[1,2048], index: 0, kind: input, shape index: {}]   ;;  %s131_s1 = inlined_call_operand.hbm [shape: f32[1,2048], index: 1, kind: output, shape index: {}]  }
   0x1   :  { %7 = vsyncpa [#allocation4], 0  ;;  %s94_s6 = smov [#allocation2]   ;;  %s46_s10 = scalar_lea.hbm %s130_s0, 256 }
   0x2   :  { %s14_s7 = sshll.u32 %s94_s6, 4  ;;  %p47_p0 = scmp.ne.s32.totalorder %s130_s0, %s46_s10  ;;  %s15_s7 = int_to_ptr.vmem [resolvable:$true] %s14_s7 }
   0x3   :  { %p50_p1 = scmp.lt.u32.totalorder %s46_s10, %s130_s0 }
   0x5   :  { %p52_p2 = pnand %p50_p1, %p47_p0 }
   0x7   :  { %55 = shalt.err (!%p52_p2)
}
   0x8   :  { %s56_s15 = scalar_lea.vmem %s15_s7, 256  ;;  %p61_p4 = scmp.lt.s32.totalorder %s15_s7, %s15_s7 }
   0x9   :  { %p57_p3 = scmp.ne.s32.totalorder %s15_s7, %s56_s15  ;;  %p62_p5 = scmp.lt.s32.totalorder %s56_s15, %s56_s15 }
   0xb   :  { %p63_p6 = por %p62_p5, %p61_p4 }
   0xd   :  { %p64_p7 = pnand %p63_p6, %p57_p3 }
   0xf   :  { %67 = shalt.err (!%p64_p7)
}
  0x10   :  { %17 = dma.hbm_to_vmem [thread:$0]  %s130_s0, 256, %s15_s7, [#allocation3]  }
  0x11   :  { %90 = dma.done.wait [#allocation3], 256  }
  0x12   :  { %91 = vsyncadd [#allocation3], 4294967040  ;;  %v21_v0 = vld [vmem:[#allocation2] sm:$0xff]  ;;  %v22_v1 = vld [vmem:[#allocation2 + $0x8] sm:$0xff]  ;;  %s95_s18 = smov [#allocation5]  }
  0x13   :  { %s35_s19 = sshll.u32 %s95_s18, 4  ;;  %v23_v2 = vmul.f32 2.0, %v21_v0  ;;  %v24_v3 = vmul.f32 2.0, %v22_v1  ;;  %s36_s19 = int_to_ptr.vmem [resolvable:$true] %s35_s19 }
  0x14   :  { %s68_s20 = scalar_lea.vmem %s36_s19, 256  ;;  %p73_p9 = scmp.lt.s32.totalorder %s36_s19, %s36_s19 }
  0x15   :  { %v25_v4 = vadd.f32 1.0, %v23_v2  ;;  %v26_v5 = vadd.f32 1.0, %v24_v3  ;;  %p69_p8 = scmp.ne.s32.totalorder %s36_s19, %s68_s20  ;;  %p74_p10 = scmp.lt.s32.totalorder %s68_s20, %s68_s20 }
  0x17   :  { %27 = vst [vmem:[#allocation5] sm:$0xff] %v25_v4  ;;  %28 = vst [vmem:[#allocation5 + $0x8] sm:$0xff] %v26_v5  ;;  %p75_p11 = por %p74_p10, %p73_p9 }
  0x19   :  { %p76_p12 = pnand %p75_p11, %p69_p8 }
  0x1b   :  { %79 = shalt.err (!%p76_p12)
}
  0x1c   :  { %s80_s22 = scalar_lea.hbm %s131_s1, 256 }
  0x1d   :  { %p81_p13 = scmp.ne.s32.totalorder %s131_s1, %s80_s22  ;;  %p84_p0 = scmp.lt.u32.totalorder %s80_s22, %s131_s1 }
  0x1f   :  { %p86_p1 = pnand %p84_p0, %p81_p13 }
  0x21   :  { %89 = shalt.err (!%p86_p1)
}
  0x22   :  { %38 = dma.vmem_to_hbm [thread:$0]  %s36_s19, 256, %s131_s1, [#allocation4]  }
  0x23   :  { %92 = dma.done.wait [#allocation4], 256  }
  0x24   :  { %93 = vsyncadd [#allocation4], 4294967040 }
  0x25   :  { %42 = vsyncpa [#allocation3], 1 }
  0x26   :  { %43 = vsyncpa [#allocation4], 1 }

</bundles_post_ra>
